<compile_context>
chip_gen: v6e
topology: v6e:2x2x1
jax: 0.10.0
libtpu: 0.0.40
codegen_flags: <defaults>
</compile_context>

<pallas_src>
import functools

import jax
import jax.numpy as jnp
from jax.experimental import pallas as pl
from jax.experimental.pallas import tpu as pltpu


# ----------------------------------------------------------------------------
# Kernels
# ----------------------------------------------------------------------------

def _concat_copy_kernel(*refs):
    """Fallback path: copy each input VMEM tile into its (static, compile-time)
    column slice of the output VMEM tile.  Handles ragged batch tiles and
    non-128-aligned widths via Pallas/compiler masking."""
    in_refs, out_ref = refs[:-1], refs[-1]
    off = 0
    for r in in_refs:
        d = r.shape[-1]
        out_ref[:, off:off + d] = r[...]
        off += d


def _concat_dma_kernel(*refs, widths, block_b):
    """Primary path: DMA each HBM input's batch slice straight into its
    128-aligned column range of the staged VMEM output block.  No input VMEM
    tiles, no VMEM->VMEM copy phase — the kernel is pure DMA and the output
    writeback stays one contiguous, lane-dense slab."""
    n = len(widths)
    in_refs = refs[:n]
    out_ref = refs[n]
    sem = refs[n + 1]

    row0 = pl.multiple_of(pl.program_id(0) * block_b, block_b)
    copies = []
    off = 0
    for i, (r, d) in enumerate(zip(in_refs, widths)):
        cp = pltpu.make_async_copy(
            r.at[pl.ds(row0, block_b), :],     # HBM batch slice of input i
            out_ref.at[:, off:off + d],        # its column range in the block
            sem.at[i],
        )
        cp.start()
        copies.append(cp)
        off += d
    for cp in copies:
        cp.wait()


# ----------------------------------------------------------------------------
# Wrapper
# ----------------------------------------------------------------------------

def _round_down(x, m):
    return (x // m) * m


def _tpu_vmem_capacity_bytes():
    try:
        return int(pltpu.get_tpu_info().vmem_capacity_bytes)
    except Exception:
        return 64 * 1024 * 1024  # conservative fallback (v7x per-TC VMEM)


def _has_two_tensorcores():
    try:
        kind = jax.devices()[0].device_kind.lower()
    except Exception:
        return False
    return ("v7" in kind) or ("7x" in kind)


def concat_features(xs):
    """Pallas equivalent of torch.cat(xs, dim=1) for a list of (B, D_i) arrays."""
    assert len(xs) >= 1
    b = int(xs[0].shape[0])
    dtype = xs[0].dtype
    for x in xs:
        assert x.ndim == 2 and int(x.shape[0]) == b and x.dtype == dtype

    widths = tuple(int(x.shape[1]) for x in xs)
    total_d = sum(widths)
    itemsize = jnp.dtype(dtype).itemsize
    out_shape = jax.ShapeDtypeStruct((b, total_d), dtype)

    # --- generation-aware VMEM budget ---------------------------------------
    vmem_cap = _tpu_vmem_capacity_bytes()          # 128 MiB v5e/v6e, 64 MiB v7x
    vmem_limit = int(vmem_cap * 0.75)              # scoped limit we request
    budget = int(vmem_cap * 0.60)                  # bytes we keep resident

    # Sub-32-bit dtypes pack along sublanes: tile the batch axis accordingly.
    sub = 8 * max(1, 4 // itemsize)                # 8 f32, 16 bf16, 32 int8/fp8
    two_tc = _has_two_tensorcores()

    def pick_block(bytes_per_row):
        max_rows = max(sub, _round_down(budget // max(1, bytes_per_row), sub))
        if b <= max_rows:
            # Whole batch fits one block.  On 2-TC chips split into two blocks
            # (when legal) so the "parallel" axis actually uses both cores.
            if two_tc and b >= 2 * sub and b % (2 * sub) == 0:
                return b // 2
            return b
        return max_rows

    cost = pl.CostEstimate(
        flops=0, transcendentals=0,
        bytes_accessed=2 * b * total_d * itemsize,  # read everything + write it
    )
    cparams = pltpu.CompilerParams(
        dimension_semantics=("parallel",),          # batch tiles independent
        vmem_limit_bytes=vmem_limit,
    )

    # --- primary path: DMA inputs directly into the output block ------------
    lane_aligned = all(w % 128 == 0 for w in widths)
    if lane_aligned:
        # Only the output block is double-buffered in VMEM on this path.
        block_b = pick_block(2 * total_d * itemsize)
        if b % block_b != 0:
            # Find a divisor of b (multiple of `sub`) so no tile is partial.
            cand = _round_down(min(block_b, b), sub)
            while cand >= sub and b % cand != 0:
                cand -= sub
            block_b = cand if (cand >= sub and b % cand == 0) else 0
        if block_b:
            kernel = functools.partial(
                _concat_dma_kernel, widths=widths, block_b=block_b)
            try:
                return pl.pallas_call(
                    kernel,
                    out_shape=out_shape,
                    grid=(b // block_b,),
                    in_specs=[pl.BlockSpec(memory_space=pl.ANY)] * len(xs),
                    out_specs=pl.BlockSpec((block_b, total_d), lambda i: (i, 0)),
                    scratch_shapes=[pltpu.SemaphoreType.DMA((len(xs),))],
                    compiler_params=cparams,
                    cost_estimate=cost,
                )(*xs)
            except Exception:
                # Robustness: fall back to the auto-pipelined copy path below.
                pass

    # --- fallback path: auto-pipelined VMEM copy -----------------------------
    # Inputs + output resident, each double-buffered.
    block_b = pick_block(4 * total_d * itemsize)
    return pl.pallas_call(
        _concat_copy_kernel,
        out_shape=out_shape,
        grid=(pl.cdiv(b, block_b),),
        in_specs=[pl.BlockSpec((block_b, d), lambda i: (i, 0)) for d in widths],
        out_specs=pl.BlockSpec((block_b, total_d), lambda i: (i, 0)),
        compiler_params=cparams,
        cost_estimate=cost,
    )(*xs)


# ----------------------------------------------------------------------------
# Demo / correctness check
# ----------------------------------------------------------------------------

if __name__ == "__main__":
    key = jax.random.PRNGKey(0)
    k1, k2 = jax.random.split(key)

    # Shapes consistent with the TIRG combiner: a list of two (batch, hidden)
    # feature tensors concatenated along dim=1.  batch is a multiple of 8
    # (sublanes) and hidden a multiple of 128 (lanes) so the fast DMA path is
    # taken and every output store is lane-dense.
    batch, hidden = 8, 128
    img_feats = jax.random.normal(k1, (batch, hidden), dtype=jnp.float32)
    txt_feats = jax.random.normal(k2, (batch, hidden), dtype=jnp.float32)

    out = jax.block_until_ready(concat_features([img_feats, txt_feats]))

    # Reference == torch.cat(x, dim=1)
    ref = jnp.concatenate([img_feats, txt_feats], axis=1)
    assert out.shape == (batch, 2 * hidden)
    assert out.dtype == img_feats.dtype
    assert bool(jnp.allclose(out, ref))

    print("KERNEL_OK")
</pallas_src>

<mosaic_0001>
module attributes {stable_mosaic.version = 11 : i64} {
  func.func @_concat_dma_kernel(%arg0: i32, %arg1: memref<8x128xf32, #tpu.memory_space<any>>, %arg2: memref<8x128xf32, #tpu.memory_space<any>>, %arg3: memref<8x256xf32, #tpu.memory_space<vmem>>, %arg4: memref<2x!tpu.dma_semaphore, #tpu.memory_space<semaphore_mem>>) attributes {dimension_semantics = [#tpu.dimension_semantics<parallel>], iteration_bounds = array<i64: 1>, scalar_prefetch = 0 : i64, scratch_operands = 1 : i64, tpu.core_type = #tpu.core_type<tc>, window_params = [{}, {}, {transform_indices = @transform_2, window_bounds = array<i64: 8, 256>}]} {
    %c8_i32 = arith.constant 8 : i32
    %0 = arith.muli %arg0, %c8_i32 : i32
    %1 = tpu.assume_multiple %0, 8 : i32
    %c0_i32 = arith.constant 0 : i32
    %c0_i32_0 = arith.constant 0 : i32
    %2 = tpu.memref_slice %arg1[%1, %c0_i32_0] : memref<8x128xf32, #tpu.memory_space<any>> -> memref<8x128xf32, #tpu.memory_space<any>>
    %c0_i32_1 = arith.constant 0 : i32
    %c0_i32_2 = arith.constant 0 : i32
    %3 = tpu.memref_slice %arg3[%c0_i32_1, %c0_i32_2] : memref<8x256xf32, #tpu.memory_space<vmem>> -> memref<8x128xf32, #tpu.memory_space<vmem>>
    %4 = tpu.memref_slice %arg4[%c0_i32] : memref<2x!tpu.dma_semaphore, #tpu.memory_space<semaphore_mem>> -> memref<1x!tpu.dma_semaphore, #tpu.memory_space<semaphore_mem>>
    %5 = tpu.memref_squeeze %4 : memref<1x!tpu.dma_semaphore, #tpu.memory_space<semaphore_mem>> -> memref<!tpu.dma_semaphore, #tpu.memory_space<semaphore_mem>>
    tpu.enqueue_dma source(%2 : memref<8x128xf32, #tpu.memory_space<any>>) target(%3 : memref<8x128xf32, #tpu.memory_space<vmem>>) target_semaphore(%5 : memref<!tpu.dma_semaphore, #tpu.memory_space<semaphore_mem>>)
    %c1_i32 = arith.constant 1 : i32
    %c0_i32_3 = arith.constant 0 : i32
    %6 = tpu.memref_slice %arg2[%1, %c0_i32_3] : memref<8x128xf32, #tpu.memory_space<any>> -> memref<8x128xf32, #tpu.memory_space<any>>
    %c0_i32_4 = arith.constant 0 : i32
    %c128_i32 = arith.constant 128 : i32
    %7 = tpu.memref_slice %arg3[%c0_i32_4, %c128_i32] : memref<8x256xf32, #tpu.memory_space<vmem>> -> memref<8x128xf32, #tpu.memory_space<vmem>>
    %8 = tpu.memref_slice %arg4[%c1_i32] : memref<2x!tpu.dma_semaphore, #tpu.memory_space<semaphore_mem>> -> memref<1x!tpu.dma_semaphore, #tpu.memory_space<semaphore_mem>>
    %9 = tpu.memref_squeeze %8 : memref<1x!tpu.dma_semaphore, #tpu.memory_space<semaphore_mem>> -> memref<!tpu.dma_semaphore, #tpu.memory_space<semaphore_mem>>
    tpu.enqueue_dma source(%6 : memref<8x128xf32, #tpu.memory_space<any>>) target(%7 : memref<8x128xf32, #tpu.memory_space<vmem>>) target_semaphore(%9 : memref<!tpu.dma_semaphore, #tpu.memory_space<semaphore_mem>>)
    %c0_i32_5 = arith.constant 0 : i32
    %c0_i32_6 = arith.constant 0 : i32
    %10 = tpu.memref_slice %arg1[%1, %c0_i32_6] : memref<8x128xf32, #tpu.memory_space<any>> -> memref<8x128xf32, #tpu.memory_space<any>>
    %c0_i32_7 = arith.constant 0 : i32
    %c0_i32_8 = arith.constant 0 : i32
    %11 = tpu.memref_slice %arg3[%c0_i32_7, %c0_i32_8] : memref<8x256xf32, #tpu.memory_space<vmem>> -> memref<8x128xf32, #tpu.memory_space<vmem>>
    %12 = tpu.memref_slice %arg4[%c0_i32_5] : memref<2x!tpu.dma_semaphore, #tpu.memory_space<semaphore_mem>> -> memref<1x!tpu.dma_semaphore, #tpu.memory_space<semaphore_mem>>
    %13 = tpu.memref_squeeze %12 : memref<1x!tpu.dma_semaphore, #tpu.memory_space<semaphore_mem>> -> memref<!tpu.dma_semaphore, #tpu.memory_space<semaphore_mem>>
    tpu.wait_dma2 semaphore(%13 : memref<!tpu.dma_semaphore, #tpu.memory_space<semaphore_mem>>) src(%10 : memref<8x128xf32, #tpu.memory_space<any>>) dst(%11 : memref<8x128xf32, #tpu.memory_space<vmem>>)
    %c1_i32_9 = arith.constant 1 : i32
    %c0_i32_10 = arith.constant 0 : i32
    %14 = tpu.memref_slice %arg2[%1, %c0_i32_10] : memref<8x128xf32, #tpu.memory_space<any>> -> memref<8x128xf32, #tpu.memory_space<any>>
    %c0_i32_11 = arith.constant 0 : i32
    %c128_i32_12 = arith.constant 128 : i32
    %15 = tpu.memref_slice %arg3[%c0_i32_11, %c128_i32_12] : memref<8x256xf32, #tpu.memory_space<vmem>> -> memref<8x128xf32, #tpu.memory_space<vmem>>
    %16 = tpu.memref_slice %arg4[%c1_i32_9] : memref<2x!tpu.dma_semaphore, #tpu.memory_space<semaphore_mem>> -> memref<1x!tpu.dma_semaphore, #tpu.memory_space<semaphore_mem>>
    %17 = tpu.memref_squeeze %16 : memref<1x!tpu.dma_semaphore, #tpu.memory_space<semaphore_mem>> -> memref<!tpu.dma_semaphore, #tpu.memory_space<semaphore_mem>>
    tpu.wait_dma2 semaphore(%17 : memref<!tpu.dma_semaphore, #tpu.memory_space<semaphore_mem>>) src(%14 : memref<8x128xf32, #tpu.memory_space<any>>) dst(%15 : memref<8x128xf32, #tpu.memory_space<vmem>>)
    return
  }
  func.func @transform_2(%arg0: i32) -> (i32, i32) {
    %c0_i32 = arith.constant 0 : i32
    %c0_i32_0 = arith.constant 0 : i32
    return %arg0, %c0_i32 : i32, i32
  }
}

module attributes {stable_mosaic.version = 11 : i64} {
  func.func @_concat_copy_kernel(%arg0: i32, %arg1: memref<8x128xf32, #tpu.memory_space<vmem>>, %arg2: memref<8x128xf32, #tpu.memory_space<vmem>>, %arg3: memref<8x256xf32, #tpu.memory_space<vmem>>) attributes {dimension_semantics = [#tpu.dimension_semantics<parallel>], iteration_bounds = array<i64: 1>, scalar_prefetch = 0 : i64, scratch_operands = 0 : i64, tpu.core_type = #tpu.core_type<tc>, window_params = [{transform_indices = @transform_0, window_bounds = array<i64: 8, 128>}, {transform_indices = @transform_1, window_bounds = array<i64: 8, 128>}, {transform_indices = @transform_2, window_bounds = array<i64: 8, 256>}]} {
    %c0 = arith.constant 0 : index
    %c0_0 = arith.constant 0 : index
    %0 = vector.load %arg1[%c0, %c0_0] : memref<8x128xf32, #tpu.memory_space<vmem>>, vector<8x128xf32>
    %c0_1 = arith.constant 0 : index
    %c0_2 = arith.constant 0 : index
    %1 = vector.load %arg3[%c0_1, %c0_2] : memref<8x256xf32, #tpu.memory_space<vmem>>, vector<8x128xf32>
    tpu.vector_store %arg3[%c0_1, %c0_2], %0 {strides = array<i32>} : memref<8x256xf32, #tpu.memory_space<vmem>>, vector<8x128xf32>,
    %c0_3 = arith.constant 0 : index
    %c0_4 = arith.constant 0 : index
    %2 = vector.load %arg2[%c0_3, %c0_4] : memref<8x128xf32, #tpu.memory_space<vmem>>, vector<8x128xf32>
    %c0_5 = arith.constant 0 : index
    %c128 = arith.constant 128 : index
    %3 = vector.load %arg3[%c0_5, %c128] : memref<8x256xf32, #tpu.memory_space<vmem>>, vector<8x128xf32>
    tpu.vector_store %arg3[%c0_5, %c128], %2 {strides = array<i32>} : memref<8x256xf32, #tpu.memory_space<vmem>>, vector<8x128xf32>,
    return
  }
  func.func @transform_0(%arg0: i32) -> (i32, i32) {
    %c0_i32 = arith.constant 0 : i32
    %c0_i32_0 = arith.constant 0 : i32
    return %arg0, %c0_i32 : i32, i32
  }
  func.func @transform_1(%arg0: i32) -> (i32, i32) {
    %c0_i32 = arith.constant 0 : i32
    %c0_i32_0 = arith.constant 0 : i32
    return %arg0, %c0_i32 : i32, i32
  }
  func.func @transform_2(%arg0: i32) -> (i32, i32) {
    %c0_i32 = arith.constant 0 : i32
    %c0_i32_0 = arith.constant 0 : i32
    return %arg0, %c0_i32 : i32, i32
  }
}

</mosaic_0001>

<bundles_post_ra>
// kernel: tpu_custom_call.1
= control target key start
LH: loop header
LB: loop body
LE: loop exit
PB: predicated region body
PF: predicated region fallthrough
CT: control target
= control target key end

     0   :  { %7 = vsyncpa [#allocation4], 0  ;;  %s140_s9 = smov [#allocation3]   ;;  %s141_s11 = smov [#allocation3 + $0x8]   ;;  %s168_s0 = inlined_call_operand.hbm [shape: f32[8,128], index: 0, kind: input, shape index: {}]   ;;  %s169_s1 = inlined_call_operand.hbm [shape: f32[8,128], index: 1, kind: input, shape index: {}]   ;;  %s170_s2 = inlined_call_operand.hbm [shape: f32[8,256], index: 2, kind: output, shape index: {}]  }
   0x1   :  { %s18_s10 = sshll.u32 %s140_s9, 4  ;;  %s33_s12 = sshll.u32 %s141_s11, 4  ;;  %s19_s10 = int_to_ptr.vmem [resolvable:$true] %s18_s10  ;;  %s34_s12 = int_to_ptr.vmem [resolvable:$true] %s33_s12 }
   0x2   :  { %s82_s13 = scalar_lea.vmem %s19_s10, 128  ;;  %s86_s14 = scalar_lea.vmem %s19_s10, 256 }
   0x3   :  { %p83_p0 = scmp.ne.s32.totalorder %s19_s10, %s82_s13  ;;  %p87_p1 = scmp.lt.s32.totalorder %s19_s10, %s19_s10 }
   0x4   :  { %p88_p2 = scmp.lt.s32.totalorder %s86_s14, %s82_s13 }
   0x6   :  { %p89_p3 = por %p88_p2, %p87_p1 }
   0x8   :  { %p90_p4 = pnand %p89_p3, %p83_p0 }
   0xa   :  { %93 = shalt.err (!%p90_p4)  }
   0xb   :  { %21 = dma.hbm_to_vmem [thread:$0]  %s168_s0, 128, %s19_s10, [#allocation2] }
   0xc   :  { %s102_s17 = scalar_lea.vmem %s34_s12, 128  ;;  %p107_p6 = scmp.lt.s32.totalorder %s34_s12, %s19_s10 }
   0xd   :  { %p103_p5 = scmp.ne.s32.totalorder %s34_s12, %s102_s17  ;;  %p108_p7 = scmp.lt.s32.totalorder %s86_s14, %s102_s17 }
   0xf   :  { %p109_p8 = por %p108_p7, %p107_p6 }
  0x11   :  { %p110_p9 = pnand %p109_p8, %p103_p5 }
  0x13   :  { %113 = shalt.err (!%p110_p9)  }
  0x14   :  { %36 = dma.hbm_to_vmem [thread:$0]  %s169_s1, 128, %s34_s12, [#allocation2 + $0x1] }
  0x15   :  { %134 = dma.done.wait [#allocation2], 128 }
  0x16   :  { %135 = vsyncadd [#allocation2], 4294967168 }
  0x17   :  { %136 = dma.done.wait [#allocation2 + $0x1], 128 }
  0x18   :  { %137 = vsyncadd [#allocation2 + $0x1], 4294967168  ;;  %p115_p10 = scmp.ne.s32.totalorder %s19_s10, %s86_s14  ;;  %p120_p11 = scmp.lt.s32.totalorder %s86_s14, %s86_s14 }
  0x1a   :  { %p121_p12 = por %p120_p11, %p87_p1 }
  0x1c   :  { %p122_p13 = pnand %p121_p12, %p115_p10 }
  0x1e   :  { %125 = shalt.err (!%p122_p13)
}
  0x1f   :  { %52 = dma.vmem_to_hbm [thread:$0]  %s19_s10, 256, %s170_s2, [#allocation4]  }
  0x20   :  { %138 = dma.done.wait [#allocation4], 256  }
  0x21   :  { %139 = vsyncadd [#allocation4], 4294967040 }
  0x22   :  { %56 = vsyncpa [#allocation4], 1 }
  0x23   :  { %57 = vsyncmov [#allocation2] }
  0x26   :  { %s58_s21 = vpop.sfrf %57 }
  0x27   :  { %p70_p0 = scmp.ne.s32.totalorder %s58_s21, 0 }
  0x29   :  { %62 = shalt.err (%p70_p0)  }
  0x2a   :  { %64 = vsyncmov [#allocation2 + $0x1] }
  0x2d   :  { %s65_s1 = vpop.sfrf %64 }
  0x2e   :  { %p71_p2 = scmp.ne.s32.totalorder %s65_s1, 0 }
  0x30   :  { %69 = shalt.err (%p71_p2)  }

// kernel: tpu_custom_call.1
= control target key start
LH: loop header
LB: loop body
LE: loop exit
PB: predicated region body
PF: predicated region fallthrough
CT: control target
= control target key end

     0   :  { %7 = vsyncpa [#allocation3], 0  ;;  %s152_s0 = inlined_call_operand.hbm [shape: f32[8,128], index: 0, kind: input, shape index: {}]   ;;  %s153_s1 = inlined_call_operand.hbm [shape: f32[8,128], index: 1, kind: input, shape index: {}]   ;;  %s154_s2 = inlined_call_operand.hbm [shape: f32[8,256], index: 2, kind: output, shape index: {}]  }
   0x1   :  { %8 = vsyncpa [#allocation6], 0 }
   0x2   :  { %9 = vsyncpa [#allocation4], 0  ;;  %s125_s9 = smov [#allocation2]   ;;  %s126_s11 = smov [#allocation5]  }
   0x3   :  { %s16_s10 = sshll.u32 %s125_s9, 4  ;;  %s26_s12 = sshll.u32 %s126_s11, 4  ;;  %s17_s10 = int_to_ptr.vmem [resolvable:$true] %s16_s10  ;;  %s27_s12 = int_to_ptr.vmem [resolvable:$true] %s26_s12 }
   0x4   :  { %s67_s13 = scalar_lea.vmem %s17_s10, 128  ;;  %p72_p1 = scmp.lt.s32.totalorder %s17_s10, %s17_s10 }
   0x5   :  { %p68_p0 = scmp.ne.s32.totalorder %s17_s10, %s67_s13  ;;  %p73_p2 = scmp.lt.s32.totalorder %s67_s13, %s67_s13 }
   0x7   :  { %p74_p3 = por %p73_p2, %p72_p1 }
   0x9   :  { %p75_p4 = pnand %p74_p3, %p68_p0 }
   0xb   :  { %78 = shalt.err (!%p75_p4)
}
   0xc   :  { %19 = dma.hbm_to_vmem [thread:$0]  %s152_s0, 128, %s17_s10, [#allocation3]  }
   0xd   :  { %s87_s16 = scalar_lea.vmem %s27_s12, 128  ;;  %p92_p6 = scmp.lt.s32.totalorder %s27_s12, %s27_s12 }
   0xe   :  { %p88_p5 = scmp.ne.s32.totalorder %s27_s12, %s87_s16  ;;  %p93_p7 = scmp.lt.s32.totalorder %s87_s16, %s87_s16 }
  0x10   :  { %p94_p8 = por %p93_p7, %p92_p6 }
  0x12   :  { %p95_p9 = pnand %p94_p8, %p88_p5 }
  0x14   :  { %98 = shalt.err (!%p95_p9)
}
  0x15   :  { %29 = dma.hbm_to_vmem [thread:$0]  %s153_s1, 128, %s27_s12, [#allocation6]  }
  0x16   :  { %119 = dma.done.wait [#allocation3], 128  }
  0x17   :  { %120 = vsyncadd [#allocation3], 4294967168 }
  0x18   :  { %121 = dma.done.wait [#allocation6], 128  }
  0x19   :  { %122 = vsyncadd [#allocation6], 4294967168  ;;  %s127_s19 = smov [#allocation7]   ;;  %v36_v0 = vld [vmem:[#allocation2] sm:$0xff]  ;;  %v38_v1 = vld [vmem:[#allocation5] sm:$0xff] }
  0x1a   :  { %s46_s20 = sshll.u32 %s127_s19, 4  ;;  %37 = vst [vmem:[#allocation7] sm:$0xff] %v36_v0  ;;  %39 = vst [vmem:[#allocation7 + $0x8] sm:$0xff] %v38_v1  ;;  %s47_s20 = int_to_ptr.vmem [resolvable:$true] %s46_s20 }
  0x1b   :  { %s99_s0 = scalar_lea.vmem %s47_s20, 256  ;;  %p104_p11 = scmp.lt.s32.totalorder %s47_s20, %s47_s20 }
  0x1c   :  { %p100_p10 = scmp.ne.s32.totalorder %s47_s20, %s99_s0  ;;  %p105_p12 = scmp.lt.s32.totalorder %s99_s0, %s99_s0 }
  0x1e   :  { %p106_p13 = por %p105_p12, %p104_p11 }
  0x20   :  { %p107_p0 = pnand %p106_p13, %p100_p10 }
  0x22   :  { %110 = shalt.err (!%p107_p0)
}
  0x23   :  { %49 = dma.vmem_to_hbm [thread:$0]  %s47_s20, 256, %s154_s2, [#allocation4]  }
  0x24   :  { %123 = dma.done.wait [#allocation4], 256  }
  0x25   :  { %124 = vsyncadd [#allocation4], 4294967040 }
  0x26   :  { %53 = vsyncpa [#allocation3], 1 }
  0x27   :  { %54 = vsyncpa [#allocation6], 1 }
  0x28   :  { %55 = vsyncpa [#allocation4], 1 }

</bundles_post_ra>
